<compile_context>
chip_gen: v7x
topology: tpu7x:2x2x1
jax: 0.10.0
libtpu: 0.0.40
codegen_flags: <defaults>
</compile_context>

<pallas_src>
import jax
import jax.numpy as jnp
from jax import lax
from jax.experimental import pallas as pl
from jax.experimental.pallas import tpu as pltpu
import numpy as np

GATE_PITCH = 128                       # each gate gets its own 128-lane stripe
_GATE_SCALE = (0.5, 0.5, 1.0, 0.5)     # [i, f, g, o]; 0.5 folds sigmoid -> tanh form


def _round_up(n, m):
    return ((n + m - 1) // m) * m


def _blob_offsets(input_dim, hidden_dim):
    """Row offsets of W_ih / W_hh / bias inside the packed weight blob."""
    off_wih = 0
    off_whh = _round_up(input_dim, 8)            # keep W_hh sublane-aligned
    off_b = off_whh + _round_up(hidden_dim, 8)   # keep bias row sublane-aligned
    rows = off_b + 1
    return off_wih, off_whh, off_b, rows


def pack_mfcc_unilstm_params(w_ih, w_hh, b_ih, b_hh):
    """One-time repack of PyTorch nn.LSTM weights (call at init, not per forward).

    w_ih: (4H, I), w_hh: (4H, H), b_ih/b_hh: (4H,)  (PyTorch layout, [i,f,g,o] blocks)

    Returns a single (rows, 4*GP) f32 blob:
      rows [0, I)                : W_ih^T, gate k in lanes [k*GP, k*GP + H)
      rows [off_whh, off_whh+H)  : W_hh^T, same lane layout
      row  off_b                 : combined bias (b_ih + b_hh)
    The i/f/o gate columns (and bias) are pre-scaled by 0.5 (exact in f32) so the
    kernel can use sigmoid(z) = 0.5 + 0.5 * tanh(gate).  Padded lanes are zero.
    """
    w_ih = np.asarray(w_ih, np.float32)          # (4H, I)
    w_hh = np.asarray(w_hh, np.float32)          # (4H, H)
    b = np.asarray(b_ih, np.float32) + np.asarray(b_hh, np.float32)   # (4H,)
    four_h, input_dim = w_ih.shape
    hidden_dim = four_h // 4
    gp = GATE_PITCH
    assert hidden_dim <= gp, "hidden_dim must fit in one 128-lane gate stripe"

    off_wih, off_whh, off_b, rows = _blob_offsets(input_dim, hidden_dim)
    blob = np.zeros((rows, 4 * gp), np.float32)
    for k, scale in enumerate(_GATE_SCALE):
        lo, hi = k * gp, k * gp + hidden_dim
        rs, re = k * hidden_dim, (k + 1) * hidden_dim
        blob[off_wih:off_wih + input_dim, lo:hi] = scale * w_ih[rs:re, :].T
        blob[off_whh:off_whh + hidden_dim, lo:hi] = scale * w_hh[rs:re, :].T
        blob[off_b, lo:hi] = scale * b[rs:re]
    return jnp.asarray(blob)


def lstm_kernel(x_ref, blob_ref, s0_ref, sT_ref, xproj_s):
    """Single-layer LSTM over the full sequence (batch = 1).

    x_ref    : (T, I)          time-major input
    blob_ref : (rows, 4*GP)    packed W_ih / W_hh / bias blob (see pack fn)
    s0_ref   : (2, H)          row 0 = h0, row 1 = c0   (aliased with sT_ref)
    sT_ref   : (2, H)          row 0 = hT, row 1 = cT
    xproj_s  : (T, 4*GP)       VMEM scratch: hoisted input projection + bias
    """
    T, input_dim = x_ref.shape
    hidden_dim = s0_ref.shape[1]
    gp = blob_ref.shape[1] // 4
    off_wih, off_whh, off_b, _ = _blob_offsets(input_dim, hidden_dim)

    w_ih = blob_ref[off_wih:off_wih + input_dim, :]        # (I, 4*GP)
    w_hh = blob_ref[off_whh:off_whh + hidden_dim, :]       # (H, 4*GP)
    bias = blob_ref[off_b:off_b + 1, :]                    # (1, 4*GP)

    # Hoisted input projection: one (T, I) @ (I, 4*GP) matmul + bias, outside
    # the serial recurrence.
    xproj_s[...] = (jnp.dot(x_ref[...], w_ih,
                            preferred_element_type=jnp.float32) + bias)

    # Initial state: read ONCE (safe even though s0 aliases sT — we only write
    # sT after the loop).
    h0 = s0_ref[0:1, :]                                    # (1, H)
    c0 = s0_ref[1:2, :]                                    # (1, H)

    def step(t, carry):
        h, c = carry                                       # live in vregs
        # One lane-dense gate matmul per step: (1, H) @ (H, 4*GP) -> (1, 4*GP).
        gates = xproj_s[pl.ds(t, 1), :] + jnp.dot(
            h, w_hh, preferred_element_type=jnp.float32)
        # Single EUP pass over all four gate stripes.  i/f/o columns were
        # pre-scaled by 0.5, so sigmoid(z) = 0.5 + 0.5 * tanh(gate).
        tg = jnp.tanh(gates)                               # (1, 4*GP)
        # Each gate starts at lane offset 0 of its own 128-lane stripe:
        # pure masked selects, no XLU rotates.
        i_g = 0.5 + 0.5 * tg[:, 0 * gp:0 * gp + hidden_dim]
        f_g = 0.5 + 0.5 * tg[:, 1 * gp:1 * gp + hidden_dim]
        g_g = tg[:, 2 * gp:2 * gp + hidden_dim]
        o_g = 0.5 + 0.5 * tg[:, 3 * gp:3 * gp + hidden_dim]

        c_new = f_g * c + i_g * g_g
        h_new = o_g * jnp.tanh(c_new)
        return (h_new, c_new)

    # Full unroll only for short sequences (T=8 here); cap otherwise.
    unroll = True if T <= 16 else 8
    h_fin, c_fin = lax.fori_loop(0, T, step, (h0, c0), unroll=unroll)

    sT_ref[0:1, :] = h_fin
    sT_ref[1:2, :] = c_fin


@jax.jit
def mfcc_unilstm_forward(x, weights_blob, hidden):
    """Pallas equivalent of MFCCUniLSTM.forward.

    x            : (T, I) float32 — mixed_mfcc_at_t (implicit batch dim of 1)
    weights_blob : output of pack_mfcc_unilstm_params
    hidden       : (h0, c0), each (1, 1, H)

    Returns (blended_at_t of shape (H, 1), new_hidden=(h_n, c_n) each (1, 1, H)).
    """
    h0, c0 = hidden
    hidden_dim = h0.shape[-1]
    x = x.astype(jnp.float32)
    T, input_dim = x.shape
    gp = weights_blob.shape[1] // 4

    # Pack h0/c0 into one (2, H) state array -> a single (aliased) DMA pair.
    state0 = jnp.concatenate(
        [h0.reshape(1, hidden_dim), c0.reshape(1, hidden_dim)],
        axis=0).astype(jnp.float32)

    flops = 2 * T * input_dim * 4 * gp + 2 * T * hidden_dim * 4 * gp
    transcendentals = T * (4 * gp + hidden_dim)
    bytes_accessed = 4 * (x.size + weights_blob.size + 2 * state0.size
                          + T * 4 * gp)

    stateT = pl.pallas_call(
        lstm_kernel,
        out_shape=jax.ShapeDtypeStruct((2, hidden_dim), jnp.float32),
        in_specs=[pl.BlockSpec(memory_space=pltpu.MemorySpace.VMEM)] * 3,
        out_specs=pl.BlockSpec(memory_space=pltpu.MemorySpace.VMEM),
        scratch_shapes=[pltpu.VMEM((T, 4 * gp), jnp.float32)],  # hoisted X_proj
        # Carry the recurrent state in place for streaming callers.
        input_output_aliases={2: 0},
        cost_estimate=pl.CostEstimate(flops=flops,
                                      transcendentals=transcendentals,
                                      bytes_accessed=bytes_accessed),
    )(x, weights_blob, state0)

    hT = stateT[0, :]
    cT = stateT[1, :]
    blended_at_t = hT.reshape(-1, 1)                 # == lstm_out[-1].view(-1, 1)
    new_hidden = (hT.reshape(1, 1, hidden_dim), cT.reshape(1, 1, hidden_dim))
    return blended_at_t, new_hidden


def lstm_reference(x, w_ih, w_hh, b_ih, b_hh, h0, c0):
    """Pure-JAX reference replicating PyTorch nn.LSTM math (batch=1)."""
    H = h0.shape[-1]
    h = h0.reshape(1, H)
    c = c0.reshape(1, H)
    for t in range(x.shape[0]):
        gates = x[t:t + 1] @ w_ih.T + b_ih + h @ w_hh.T + b_hh
        i = jax.nn.sigmoid(gates[:, 0:H])
        f = jax.nn.sigmoid(gates[:, H:2 * H])
        g = jnp.tanh(gates[:, 2 * H:3 * H])
        o = jax.nn.sigmoid(gates[:, 3 * H:4 * H])
        c = f * c + i * g
        h = o * jnp.tanh(c)
    return h.reshape(-1, 1)


if __name__ == "__main__":
    # Shapes consistent with the module: seq_len=8 "chunks", mfcc_chunk_size=16,
    # hidden_dim_unilstm=32.
    T, I, H = 8, 16, 32

    key = jax.random.PRNGKey(0)
    k_x, k_wih, k_whh, k_bih, k_bhh = jax.random.split(key, 5)

    bound = 1.0 / np.sqrt(H)  # PyTorch's default LSTM init range
    x = jax.random.normal(k_x, (T, I), dtype=jnp.float32)
    w_ih = jax.random.uniform(k_wih, (4 * H, I), jnp.float32, -bound, bound)
    w_hh = jax.random.uniform(k_whh, (4 * H, H), jnp.float32, -bound, bound)
    b_ih = jax.random.uniform(k_bih, (4 * H,), jnp.float32, -bound, bound)
    b_hh = jax.random.uniform(k_bhh, (4 * H,), jnp.float32, -bound, bound)

    # init_hidden(): zeros of shape (1, 1, H)
    h0 = jnp.zeros((1, 1, H), jnp.float32)
    c0 = jnp.zeros((1, 1, H), jnp.float32)

    # One-time weight repack (hoisted out of the forward pass).
    blob = pack_mfcc_unilstm_params(w_ih, w_hh, b_ih, b_hh)

    blended, (h_n, c_n) = mfcc_unilstm_forward(x, blob, (h0, c0))
    blended = jax.block_until_ready(blended)

    ref = lstm_reference(x, w_ih, w_hh, b_ih, b_hh, h0, c0)
    assert blended.shape == (H, 1), blended.shape
    assert h_n.shape == (1, 1, H) and c_n.shape == (1, 1, H)
    np.testing.assert_allclose(np.asarray(blended), np.asarray(ref),
                               rtol=1e-5, atol=1e-5)
    print("KERNEL_OK")
</pallas_src>

<mosaic_0001>
module attributes {stable_mosaic.version = 11 : i64} {
  func.func @lstm_kernel(%arg0: memref<8x16xf32, #tpu.memory_space<vmem>>, %arg1: memref<49x512xf32, #tpu.memory_space<vmem>>, %arg2: memref<2x32xf32, #tpu.memory_space<vmem>>, %arg3: memref<2x32xf32, #tpu.memory_space<vmem>>, %arg4: memref<8x512xf32, #tpu.memory_space<vmem>>) attributes {dimension_semantics = [], scalar_prefetch = 0 : i64, scratch_operands = 1 : i64, tpu.core_type = #tpu.core_type<tc>} {
    %c0 = arith.constant 0 : index
    %c0_0 = arith.constant 0 : index
    %0 = vector.load %arg1[%c0, %c0_0] : memref<49x512xf32, #tpu.memory_space<vmem>>, vector<16x512xf32>
    %c16 = arith.constant 16 : index
    %c0_1 = arith.constant 0 : index
    %1 = vector.load %arg1[%c16, %c0_1] : memref<49x512xf32, #tpu.memory_space<vmem>>, vector<32x512xf32>
    %c48 = arith.constant 48 : index
    %c0_2 = arith.constant 0 : index
    %2 = vector.load %arg1[%c48, %c0_2] : memref<49x512xf32, #tpu.memory_space<vmem>>, vector<1x512xf32>
    %c0_3 = arith.constant 0 : index
    %c0_4 = arith.constant 0 : index
    %3 = vector.load %arg0[%c0_3, %c0_4] : memref<8x16xf32, #tpu.memory_space<vmem>>, vector<8x16xf32>
    %cst = arith.constant dense<0.000000e+00> : vector<8x512xf32>
    %4 = tpu.matmul %3, %0, %cst {dimension_numbers = #tpu.dot_dimension_numbers<[1], [0], [0], [1], [0, 0, 1, 1], [], []>} : vector<8x16xf32>, vector<16x512xf32>, vector<8x512xf32> -> vector<8x512xf32>
    %5 = vector.broadcast %2 : vector<1x512xf32> to vector<8x512xf32>
    %6 = arith.addf %4, %5 : vector<8x512xf32>
    %c0_5 = arith.constant 0 : index
    %c0_6 = arith.constant 0 : index
    %7 = vector.load %arg4[%c0_5, %c0_6] : memref<8x512xf32, #tpu.memory_space<vmem>>, vector<8x512xf32>
    tpu.vector_store %arg4[%c0_5, %c0_6], %6 {strides = array<i32>} : memref<8x512xf32, #tpu.memory_space<vmem>>, vector<8x512xf32>,
    %c0_7 = arith.constant 0 : index
    %c0_8 = arith.constant 0 : index
    %8 = vector.load %arg2[%c0_7, %c0_8] : memref<2x32xf32, #tpu.memory_space<vmem>>, vector<1x32xf32>
    %c1 = arith.constant 1 : index
    %c0_9 = arith.constant 0 : index
    %9 = vector.load %arg2[%c1, %c0_9] : memref<2x32xf32, #tpu.memory_space<vmem>>, vector<1x32xf32>
    %c0_i32 = arith.constant 0 : i32
    %10 = arith.index_cast %c0_i32 : i32 to index
    %c0_10 = arith.constant 0 : index
    %11 = vector.load %arg4[%10, %c0_10] : memref<8x512xf32, #tpu.memory_space<vmem>>, vector<1x512xf32>
    %cst_11 = arith.constant dense<0.000000e+00> : vector<1x512xf32>
    %12 = tpu.matmul %8, %1, %cst_11 {dimension_numbers = #tpu.dot_dimension_numbers<[1], [0], [0], [1], [0, 0, 1, 1], [], []>} : vector<1x32xf32>, vector<32x512xf32>, vector<1x512xf32> -> vector<1x512xf32>
    %13 = arith.addf %11, %12 : vector<1x512xf32>
    %14 = math.tanh %13 : vector<1x512xf32>
    %15 = vector.extract_strided_slice %14 {offsets = [0, 0], sizes = [1, 32], strides = [1, 1]} : vector<1x512xf32> to vector<1x32xf32>
    %cst_12 = arith.constant 5.000000e-01 : f32
    %16 = vector.broadcast %cst_12 : f32 to vector<1x32xf32>
    %17 = arith.mulf %16, %15 : vector<1x32xf32>
    %cst_13 = arith.constant 5.000000e-01 : f32
    %18 = vector.broadcast %cst_13 : f32 to vector<1x32xf32>
    %19 = arith.addf %18, %17 : vector<1x32xf32>
    %20 = vector.extract_strided_slice %14 {offsets = [0, 128], sizes = [1, 32], strides = [1, 1]} : vector<1x512xf32> to vector<1x32xf32>
    %cst_14 = arith.constant 5.000000e-01 : f32
    %21 = vector.broadcast %cst_14 : f32 to vector<1x32xf32>
    %22 = arith.mulf %21, %20 : vector<1x32xf32>
    %cst_15 = arith.constant 5.000000e-01 : f32
    %23 = vector.broadcast %cst_15 : f32 to vector<1x32xf32>
    %24 = arith.addf %23, %22 : vector<1x32xf32>
    %25 = vector.extract_strided_slice %14 {offsets = [0, 256], sizes = [1, 32], strides = [1, 1]} : vector<1x512xf32> to vector<1x32xf32>
    %26 = vector.extract_strided_slice %14 {offsets = [0, 384], sizes = [1, 32], strides = [1, 1]} : vector<1x512xf32> to vector<1x32xf32>
    %cst_16 = arith.constant 5.000000e-01 : f32
    %27 = vector.broadcast %cst_16 : f32 to vector<1x32xf32>
    %28 = arith.mulf %27, %26 : vector<1x32xf32>
    %cst_17 = arith.constant 5.000000e-01 : f32
    %29 = vector.broadcast %cst_17 : f32 to vector<1x32xf32>
    %30 = arith.addf %29, %28 : vector<1x32xf32>
    %31 = arith.mulf %24, %9 : vector<1x32xf32>
    %32 = arith.mulf %19, %25 : vector<1x32xf32>
    %33 = arith.addf %31, %32 : vector<1x32xf32>
    %34 = math.tanh %33 : vector<1x32xf32>
    %35 = arith.mulf %30, %34 : vector<1x32xf32>
    %c1_i32 = arith.constant 1 : i32
    %36 = arith.index_cast %c1_i32 : i32 to index
    %c0_18 = arith.constant 0 : index
    %37 = vector.load %arg4[%36, %c0_18] : memref<8x512xf32, #tpu.memory_space<vmem>>, vector<1x512xf32>
    %cst_19 = arith.constant dense<0.000000e+00> : vector<1x512xf32>
    %38 = tpu.matmul %35, %1, %cst_19 {dimension_numbers = #tpu.dot_dimension_numbers<[1], [0], [0], [1], [0, 0, 1, 1], [], []>} : vector<1x32xf32>, vector<32x512xf32>, vector<1x512xf32> -> vector<1x512xf32>
    %39 = arith.addf %37, %38 : vector<1x512xf32>
    %40 = math.tanh %39 : vector<1x512xf32>
    %41 = vector.extract_strided_slice %40 {offsets = [0, 0], sizes = [1, 32], strides = [1, 1]} : vector<1x512xf32> to vector<1x32xf32>
    %cst_20 = arith.constant 5.000000e-01 : f32
    %42 = vector.broadcast %cst_20 : f32 to vector<1x32xf32>
    %43 = arith.mulf %42, %41 : vector<1x32xf32>
    %cst_21 = arith.constant 5.000000e-01 : f32
    %44 = vector.broadcast %cst_21 : f32 to vector<1x32xf32>
    %45 = arith.addf %44, %43 : vector<1x32xf32>
    %46 = vector.extract_strided_slice %40 {offsets = [0, 128], sizes = [1, 32], strides = [1, 1]} : vector<1x512xf32> to vector<1x32xf32>
    %cst_22 = arith.constant 5.000000e-01 : f32
    %47 = vector.broadcast %cst_22 : f32 to vector<1x32xf32>
    %48 = arith.mulf %47, %46 : vector<1x32xf32>
    %cst_23 = arith.constant 5.000000e-01 : f32
    %49 = vector.broadcast %cst_23 : f32 to vector<1x32xf32>
    %50 = arith.addf %49, %48 : vector<1x32xf32>
    %51 = vector.extract_strided_slice %40 {offsets = [0, 256], sizes = [1, 32], strides = [1, 1]} : vector<1x512xf32> to vector<1x32xf32>
    %52 = vector.extract_strided_slice %40 {offsets = [0, 384], sizes = [1, 32], strides = [1, 1]} : vector<1x512xf32> to vector<1x32xf32>
    %cst_24 = arith.constant 5.000000e-01 : f32
    %53 = vector.broadcast %cst_24 : f32 to vector<1x32xf32>
    %54 = arith.mulf %53, %52 : vector<1x32xf32>
    %cst_25 = arith.constant 5.000000e-01 : f32
    %55 = vector.broadcast %cst_25 : f32 to vector<1x32xf32>
    %56 = arith.addf %55, %54 : vector<1x32xf32>
    %57 = arith.mulf %50, %33 : vector<1x32xf32>
    %58 = arith.mulf %45, %51 : vector<1x32xf32>
    %59 = arith.addf %57, %58 : vector<1x32xf32>
    %60 = math.tanh %59 : vector<1x32xf32>
    %61 = arith.mulf %56, %60 : vector<1x32xf32>
    %c2_i32 = arith.constant 2 : i32
    %62 = arith.index_cast %c2_i32 : i32 to index
    %c0_26 = arith.constant 0 : index
    %63 = vector.load %arg4[%62, %c0_26] : memref<8x512xf32, #tpu.memory_space<vmem>>, vector<1x512xf32>
    %cst_27 = arith.constant dense<0.000000e+00> : vector<1x512xf32>
    %64 = tpu.matmul %61, %1, %cst_27 {dimension_numbers = #tpu.dot_dimension_numbers<[1], [0], [0], [1], [0, 0, 1, 1], [], []>} : vector<1x32xf32>, vector<32x512xf32>, vector<1x512xf32> -> vector<1x512xf32>
    %65 = arith.addf %63, %64 : vector<1x512xf32>
    %66 = math.tanh %65 : vector<1x512xf32>
    %67 = vector.extract_strided_slice %66 {offsets = [0, 0], sizes = [1, 32], strides = [1, 1]} : vector<1x512xf32> to vector<1x32xf32>
    %cst_28 = arith.constant 5.000000e-01 : f32
    %68 = vector.broadcast %cst_28 : f32 to vector<1x32xf32>
    %69 = arith.mulf %68, %67 : vector<1x32xf32>
    %cst_29 = arith.constant 5.000000e-01 : f32
    %70 = vector.broadcast %cst_29 : f32 to vector<1x32xf32>
    %71 = arith.addf %70, %69 : vector<1x32xf32>
    %72 = vector.extract_strided_slice %66 {offsets = [0, 128], sizes = [1, 32], strides = [1, 1]} : vector<1x512xf32> to vector<1x32xf32>
    %cst_30 = arith.constant 5.000000e-01 : f32
    %73 = vector.broadcast %cst_30 : f32 to vector<1x32xf32>
    %74 = arith.mulf %73, %72 : vector<1x32xf32>
    %cst_31 = arith.constant 5.000000e-01 : f32
    %75 = vector.broadcast %cst_31 : f32 to vector<1x32xf32>
    %76 = arith.addf %75, %74 : vector<1x32xf32>
    %77 = vector.extract_strided_slice %66 {offsets = [0, 256], sizes = [1, 32], strides = [1, 1]} : vector<1x512xf32> to vector<1x32xf32>
    %78 = vector.extract_strided_slice %66 {offsets = [0, 384], sizes = [1, 32], strides = [1, 1]} : vector<1x512xf32> to vector<1x32xf32>
    %cst_32 = arith.constant 5.000000e-01 : f32
    %79 = vector.broadcast %cst_32 : f32 to vector<1x32xf32>
    %80 = arith.mulf %79, %78 : vector<1x32xf32>
    %cst_33 = arith.constant 5.000000e-01 : f32
    %81 = vector.broadcast %cst_33 : f32 to vector<1x32xf32>
    %82 = arith.addf %81, %80 : vector<1x32xf32>
    %83 = arith.mulf %76, %59 : vector<1x32xf32>
    %84 = arith.mulf %71, %77 : vector<1x32xf32>
    %85 = arith.addf %83, %84 : vector<1x32xf32>
    %86 = math.tanh %85 : vector<1x32xf32>
    %87 = arith.mulf %82, %86 : vector<1x32xf32>
    %c3_i32 = arith.constant 3 : i32
    %88 = arith.index_cast %c3_i32 : i32 to index
    %c0_34 = arith.constant 0 : index
    %89 = vector.load %arg4[%88, %c0_34] : memref<8x512xf32, #tpu.memory_space<vmem>>, vector<1x512xf32>
    %cst_35 = arith.constant dense<0.000000e+00> : vector<1x512xf32>
    %90 = tpu.matmul %87, %1, %cst_35 {dimension_numbers = #tpu.dot_dimension_numbers<[1], [0], [0], [1], [0, 0, 1, 1], [], []>} : vector<1x32xf32>, vector<32x512xf32>, vector<1x512xf32> -> vector<1x512xf32>
    %91 = arith.addf %89, %90 : vector<1x512xf32>
    %92 = math.tanh %91 : vector<1x512xf32>
    %93 = vector.extract_strided_slice %92 {offsets = [0, 0], sizes = [1, 32], strides = [1, 1]} : vector<1x512xf32> to vector<1x32xf32>
    %cst_36 = arith.constant 5.000000e-01 : f32
    %94 = vector.broadcast %cst_36 : f32 to vector<1x32xf32>
    %95 = arith.mulf %94, %93 : vector<1x32xf32>
    %cst_37 = arith.constant 5.000000e-01 : f32
    %96 = vector.broadcast %cst_37 : f32 to vector<1x32xf32>
    %97 = arith.addf %96, %95 : vector<1x32xf32>
    %98 = vector.extract_strided_slice %92 {offsets = [0, 128], sizes = [1, 32], strides = [1, 1]} : vector<1x512xf32> to vector<1x32xf32>
    %cst_38 = arith.constant 5.000000e-01 : f32
    %99 = vector.broadcast %cst_38 : f32 to vector<1x32xf32>
    %100 = arith.mulf %99, %98 : vector<1x32xf32>
    %cst_39 = arith.constant 5.000000e-01 : f32
    %101 = vector.broadcast %cst_39 : f32 to vector<1x32xf32>
    %102 = arith.addf %101, %100 : vector<1x32xf32>
    %103 = vector.extract_strided_slice %92 {offsets = [0, 256], sizes = [1, 32], strides = [1, 1]} : vector<1x512xf32> to vector<1x32xf32>
    %104 = vector.extract_strided_slice %92 {offsets = [0, 384], sizes = [1, 32], strides = [1, 1]} : vector<1x512xf32> to vector<1x32xf32>
    %cst_40 = arith.constant 5.000000e-01 : f32
    %105 = vector.broadcast %cst_40 : f32 to vector<1x32xf32>
    %106 = arith.mulf %105, %104 : vector<1x32xf32>
    %cst_41 = arith.constant 5.000000e-01 : f32
    %107 = vector.broadcast %cst_41 : f32 to vector<1x32xf32>
    %108 = arith.addf %107, %106 : vector<1x32xf32>
    %109 = arith.mulf %102, %85 : vector<1x32xf32>
    %110 = arith.mulf %97, %103 : vector<1x32xf32>
    %111 = arith.addf %109, %110 : vector<1x32xf32>
    %112 = math.tanh %111 : vector<1x32xf32>
    %113 = arith.mulf %108, %112 : vector<1x32xf32>
    %c4_i32 = arith.constant 4 : i32
    %114 = arith.index_cast %c4_i32 : i32 to index
    %c0_42 = arith.constant 0 : index
    %115 = vector.load %arg4[%114, %c0_42] : memref<8x512xf32, #tpu.memory_space<vmem>>, vector<1x512xf32>
    %cst_43 = arith.constant dense<0.000000e+00> : vector<1x512xf32>
    %116 = tpu.matmul %113, %1, %cst_43 {dimension_numbers = #tpu.dot_dimension_numbers<[1], [0], [0], [1], [0, 0, 1, 1], [], []>} : vector<1x32xf32>, vector<32x512xf32>, vector<1x512xf32> -> vector<1x512xf32>
    %117 = arith.addf %115, %116 : vector<1x512xf32>
    %118 = math.tanh %117 : vector<1x512xf32>
    %119 = vector.extract_strided_slice %118 {offsets = [0, 0], sizes = [1, 32], strides = [1, 1]} : vector<1x512xf32> to vector<1x32xf32>
    %cst_44 = arith.constant 5.000000e-01 : f32
    %120 = vector.broadcast %cst_44 : f32 to vector<1x32xf32>
    %121 = arith.mulf %120, %119 : vector<1x32xf32>
    %cst_45 = arith.constant 5.000000e-01 : f32
    %122 = vector.broadcast %cst_45 : f32 to vector<1x32xf32>
    %123 = arith.addf %122, %121 : vector<1x32xf32>
    %124 = vector.extract_strided_slice %118 {offsets = [0, 128], sizes = [1, 32], strides = [1, 1]} : vector<1x512xf32> to vector<1x32xf32>
    %cst_46 = arith.constant 5.000000e-01 : f32
    %125 = vector.broadcast %cst_46 : f32 to vector<1x32xf32>
    %126 = arith.mulf %125, %124 : vector<1x32xf32>
    %cst_47 = arith.constant 5.000000e-01 : f32
    %127 = vector.broadcast %cst_47 : f32 to vector<1x32xf32>
    %128 = arith.addf %127, %126 : vector<1x32xf32>
    %129 = vector.extract_strided_slice %118 {offsets = [0, 256], sizes = [1, 32], strides = [1, 1]} : vector<1x512xf32> to vector<1x32xf32>
    %130 = vector.extract_strided_slice %118 {offsets = [0, 384], sizes = [1, 32], strides = [1, 1]} : vector<1x512xf32> to vector<1x32xf32>
    %cst_48 = arith.constant 5.000000e-01 : f32
    %131 = vector.broadcast %cst_48 : f32 to vector<1x32xf32>
    %132 = arith.mulf %131, %130 : vector<1x32xf32>
    %cst_49 = arith.constant 5.000000e-01 : f32
    %133 = vector.broadcast %cst_49 : f32 to vector<1x32xf32>
    %134 = arith.addf %133, %132 : vector<1x32xf32>
    %135 = arith.mulf %128, %111 : vector<1x32xf32>
    %136 = arith.mulf %123, %129 : vector<1x32xf32>
    %137 = arith.addf %135, %136 : vector<1x32xf32>
    %138 = math.tanh %137 : vector<1x32xf32>
    %139 = arith.mulf %134, %138 : vector<1x32xf32>
    %c5_i32 = arith.constant 5 : i32
    %140 = arith.index_cast %c5_i32 : i32 to index
    %c0_50 = arith.constant 0 : index
    %141 = vector.load %arg4[%140, %c0_50] : memref<8x512xf32, #tpu.memory_space<vmem>>, vector<1x512xf32>
    %cst_51 = arith.constant dense<0.000000e+00> : vector<1x512xf32>
    %142 = tpu.matmul %139, %1, %cst_51 {dimension_numbers = #tpu.dot_dimension_numbers<[1], [0], [0], [1], [0, 0, 1, 1], [], []>} : vector<1x32xf32>, vector<32x512xf32>, vector<1x512xf32> -> vector<1x512xf32>
    %143 = arith.addf %141, %142 : vector<1x512xf32>
    %144 = math.tanh %143 : vector<1x512xf32>
    %145 = vector.extract_strided_slice %144 {offsets = [0, 0], sizes = [1, 32], strides = [1, 1]} : vector<1x512xf32> to vector<1x32xf32>
    %cst_52 = arith.constant 5.000000e-01 : f32
    %146 = vector.broadcast %cst_52 : f32 to vector<1x32xf32>
    %147 = arith.mulf %146, %145 : vector<1x32xf32>
    %cst_53 = arith.constant 5.000000e-01 : f32
    %148 = vector.broadcast %cst_53 : f32 to vector<1x32xf32>
    %149 = arith.addf %148, %147 : vector<1x32xf32>
    %150 = vector.extract_strided_slice %144 {offsets = [0, 128], sizes = [1, 32], strides = [1, 1]} : vector<1x512xf32> to vector<1x32xf32>
    %cst_54 = arith.constant 5.000000e-01 : f32
    %151 = vector.broadcast %cst_54 : f32 to vector<1x32xf32>
    %152 = arith.mulf %151, %150 : vector<1x32xf32>
    %cst_55 = arith.constant 5.000000e-01 : f32
    %153 = vector.broadcast %cst_55 : f32 to vector<1x32xf32>
    %154 = arith.addf %153, %152 : vector<1x32xf32>
    %155 = vector.extract_strided_slice %144 {offsets = [0, 256], sizes = [1, 32], strides = [1, 1]} : vector<1x512xf32> to vector<1x32xf32>
    %156 = vector.extract_strided_slice %144 {offsets = [0, 384], sizes = [1, 32], strides = [1, 1]} : vector<1x512xf32> to vector<1x32xf32>
    %cst_56 = arith.constant 5.000000e-01 : f32
    %157 = vector.broadcast %cst_56 : f32 to vector<1x32xf32>
    %158 = arith.mulf %157, %156 : vector<1x32xf32>
    %cst_57 = arith.constant 5.000000e-01 : f32
    %159 = vector.broadcast %cst_57 : f32 to vector<1x32xf32>
    %160 = arith.addf %159, %158 : vector<1x32xf32>
    %161 = arith.mulf %154, %137 : vector<1x32xf32>
    %162 = arith.mulf %149, %155 : vector<1x32xf32>
    %163 = arith.addf %161, %162 : vector<1x32xf32>
    %164 = math.tanh %163 : vector<1x32xf32>
    %165 = arith.mulf %160, %164 : vector<1x32xf32>
    %c6_i32 = arith.constant 6 : i32
    %166 = arith.index_cast %c6_i32 : i32 to index
    %c0_58 = arith.constant 0 : index
    %167 = vector.load %arg4[%166, %c0_58] : memref<8x512xf32, #tpu.memory_space<vmem>>, vector<1x512xf32>
    %cst_59 = arith.constant dense<0.000000e+00> : vector<1x512xf32>
    %168 = tpu.matmul %165, %1, %cst_59 {dimension_numbers = #tpu.dot_dimension_numbers<[1], [0], [0], [1], [0, 0, 1, 1], [], []>} : vector<1x32xf32>, vector<32x512xf32>, vector<1x512xf32> -> vector<1x512xf32>
    %169 = arith.addf %167, %168 : vector<1x512xf32>
    %170 = math.tanh %169 : vector<1x512xf32>
    %171 = vector.extract_strided_slice %170 {offsets = [0, 0], sizes = [1, 32], strides = [1, 1]} : vector<1x512xf32> to vector<1x32xf32>
    %cst_60 = arith.constant 5.000000e-01 : f32
    %172 = vector.broadcast %cst_60 : f32 to vector<1x32xf32>
    %173 = arith.mulf %172, %171 : vector<1x32xf32>
    %cst_61 = arith.constant 5.000000e-01 : f32
    %174 = vector.broadcast %cst_61 : f32 to vector<1x32xf32>
    %175 = arith.addf %174, %173 : vector<1x32xf32>
    %176 = vector.extract_strided_slice %170 {offsets = [0, 128], sizes = [1, 32], strides = [1, 1]} : vector<1x512xf32> to vector<1x32xf32>
    %cst_62 = arith.constant 5.000000e-01 : f32
    %177 = vector.broadcast %cst_62 : f32 to vector<1x32xf32>
    %178 = arith.mulf %177, %176 : vector<1x32xf32>
    %cst_63 = arith.constant 5.000000e-01 : f32
    %179 = vector.broadcast %cst_63 : f32 to vector<1x32xf32>
    %180 = arith.addf %179, %178 : vector<1x32xf32>
    %181 = vector.extract_strided_slice %170 {offsets = [0, 256], sizes = [1, 32], strides = [1, 1]} : vector<1x512xf32> to vector<1x32xf32>
    %182 = vector.extract_strided_slice %170 {offsets = [0, 384], sizes = [1, 32], strides = [1, 1]} : vector<1x512xf32> to vector<1x32xf32>
    %cst_64 = arith.constant 5.000000e-01 : f32
    %183 = vector.broadcast %cst_64 : f32 to vector<1x32xf32>
    %184 = arith.mulf %183, %182 : vector<1x32xf32>
    %cst_65 = arith.constant 5.000000e-01 : f32
    %185 = vector.broadcast %cst_65 : f32 to vector<1x32xf32>
    %186 = arith.addf %185, %184 : vector<1x32xf32>
    %187 = arith.mulf %180, %163 : vector<1x32xf32>
    %188 = arith.mulf %175, %181 : vector<1x32xf32>
    %189 = arith.addf %187, %188 : vector<1x32xf32>
    %190 = math.tanh %189 : vector<1x32xf32>
    %191 = arith.mulf %186, %190 : vector<1x32xf32>
    %c7_i32 = arith.constant 7 : i32
    %192 = arith.index_cast %c7_i32 : i32 to index
    %c0_66 = arith.constant 0 : index
    %193 = vector.load %arg4[%192, %c0_66] : memref<8x512xf32, #tpu.memory_space<vmem>>, vector<1x512xf32>
    %cst_67 = arith.constant dense<0.000000e+00> : vector<1x512xf32>
    %194 = tpu.matmul %191, %1, %cst_67 {dimension_numbers = #tpu.dot_dimension_numbers<[1], [0], [0], [1], [0, 0, 1, 1], [], []>} : vector<1x32xf32>, vector<32x512xf32>, vector<1x512xf32> -> vector<1x512xf32>
    %195 = arith.addf %193, %194 : vector<1x512xf32>
    %196 = math.tanh %195 : vector<1x512xf32>
    %197 = vector.extract_strided_slice %196 {offsets = [0, 0], sizes = [1, 32], strides = [1, 1]} : vector<1x512xf32> to vector<1x32xf32>
    %cst_68 = arith.constant 5.000000e-01 : f32
    %198 = vector.broadcast %cst_68 : f32 to vector<1x32xf32>
    %199 = arith.mulf %198, %197 : vector<1x32xf32>
    %cst_69 = arith.constant 5.000000e-01 : f32
    %200 = vector.broadcast %cst_69 : f32 to vector<1x32xf32>
    %201 = arith.addf %200, %199 : vector<1x32xf32>
    %202 = vector.extract_strided_slice %196 {offsets = [0, 128], sizes = [1, 32], strides = [1, 1]} : vector<1x512xf32> to vector<1x32xf32>
    %cst_70 = arith.constant 5.000000e-01 : f32
    %203 = vector.broadcast %cst_70 : f32 to vector<1x32xf32>
    %204 = arith.mulf %203, %202 : vector<1x32xf32>
    %cst_71 = arith.constant 5.000000e-01 : f32
    %205 = vector.broadcast %cst_71 : f32 to vector<1x32xf32>
    %206 = arith.addf %205, %204 : vector<1x32xf32>
    %207 = vector.extract_strided_slice %196 {offsets = [0, 256], sizes = [1, 32], strides = [1, 1]} : vector<1x512xf32> to vector<1x32xf32>
    %208 = vector.extract_strided_slice %196 {offsets = [0, 384], sizes = [1, 32], strides = [1, 1]} : vector<1x512xf32> to vector<1x32xf32>
    %cst_72 = arith.constant 5.000000e-01 : f32
    %209 = vector.broadcast %cst_72 : f32 to vector<1x32xf32>
    %210 = arith.mulf %209, %208 : vector<1x32xf32>
    %cst_73 = arith.constant 5.000000e-01 : f32
    %211 = vector.broadcast %cst_73 : f32 to vector<1x32xf32>
    %212 = arith.addf %211, %210 : vector<1x32xf32>
    %213 = arith.mulf %206, %189 : vector<1x32xf32>
    %214 = arith.mulf %201, %207 : vector<1x32xf32>
    %215 = arith.addf %213, %214 : vector<1x32xf32>
    %216 = math.tanh %215 : vector<1x32xf32>
    %217 = arith.mulf %212, %216 : vector<1x32xf32>
    %c8_i32 = arith.constant 8 : i32
    %c0_74 = arith.constant 0 : index
    %c0_75 = arith.constant 0 : index
    %218 = vector.load %arg3[%c0_74, %c0_75] : memref<2x32xf32, #tpu.memory_space<vmem>>, vector<1x32xf32>
    tpu.vector_store %arg3[%c0_74, %c0_75], %217 {strides = array<i32>} : memref<2x32xf32, #tpu.memory_space<vmem>>, vector<1x32xf32>,
    %c1_76 = arith.constant 1 : index
    %c0_77 = arith.constant 0 : index
    %219 = vector.load %arg3[%c1_76, %c0_77] : memref<2x32xf32, #tpu.memory_space<vmem>>, vector<1x32xf32>
    tpu.vector_store %arg3[%c1_76, %c0_77], %215 {strides = array<i32>} : memref<2x32xf32, #tpu.memory_space<vmem>>, vector<1x32xf32>,
    return
  }
}

</mosaic_0001>

<bundles_post_ra>
// kernel: mfcc_unilstm_forward.1
= control target key start
LH: loop header
LB: loop body
LE: loop exit
PB: predicated region body
PF: predicated region fallthrough
CT: control target
= control target key end

     0   :  { %8 = vsyncpa [#allocation4], 0  ;;  %s2019_s12 = smov [#allocation3]   ;;  %s2213_s0 = inlined_call_operand.vmem [shape: f32[8,16], index: 0, kind: input, shape index: {}]   ;;  %s2214_s1 = inlined_call_operand.hbm [shape: f32[49,512], index: 1, kind: input, shape index: {}]   ;;  %s2215_s2 = inlined_call_operand.vmem [shape: f32[2,32], index: 2, kind: input, shape index: {}, may-alias: {2,3}]   ;;  %s2216_s3 = inlined_call_operand.vmem [shape: f32[2,32], index: 3, kind: output, shape index: {}, may-alias: {2,3}]  }
   0x1   :  { %s16_s13 = sshll.u32 %s2019_s12, 4  ;;  %s1995_s16 = scalar_lea.hbm %s2214_s1, 3584  ;;  %s17_s13 = int_to_ptr.vmem [resolvable:$true] %s16_s13 }
   0x2   :  { %p1996_p0 = scmp.ne.s32.totalorder %s2214_s1, %s1995_s16  ;;  %p1999_p1 = scmp.lt.u32.totalorder %s1995_s16, %s2214_s1 }
   0x4   :  { %p2001_p2 = pnand %p1999_p1, %p1996_p0 }
   0x6   :  { %2004 = shalt.err (!%p2001_p2)
}
   0x7   :  { %s2005_s21 = scalar_lea.vmem %s17_s13, 3584  ;;  %p2010_p4 = scmp.lt.s32.totalorder %s17_s13, %s17_s13 }
   0x8   :  { %p2006_p3 = scmp.ne.s32.totalorder %s17_s13, %s2005_s21  ;;  %p2011_p5 = scmp.lt.s32.totalorder %s2005_s21, %s2005_s21 }
   0xa   :  { %p2012_p6 = por %p2011_p5, %p2010_p4 }
   0xc   :  { %p2013_p7 = pnand %p2012_p6, %p2006_p3 }
   0xe   :  { %2016 = shalt.err (!%p2013_p7)
}
   0xf   :  { %s2020_s22 = smov 512   ;;  %s2021_s23 = smov 32  }
  0x10   :  { %22 = dma.hbm_to_vmem [thread:$0]  %s2214_s1, 3584, %s17_s13, [#allocation4], %s2020_s22, %s2020_s22, %s2021_s23  }
  0x11   :  { %2017 = dma.done.wait [#allocation4], 3584  }
  0x12   :  { %2018 = vsyncadd [#allocation4], 4294963712  ;;  %v2022_v0 = vmov 0.0   ;;  %v29_v1 = vld [vmem:[#allocation3 + $0x8] sm:$0xff]  ;;  %v31_v3 = vld [vmem:[#allocation3 + $0x18] sm:$0xff]  ;;  %vm76_vm0 = vcmask 130048   ;;  %v56_v39 = vlaneseq }
  0x13   :  { %144 = vmatprep.mubr.f32.mxu0 %v2022_v0  ;;  %215 = vmatprep.mubr.f32.mxu1 %v2022_v0  ;;  %v33_v2 = vld [vmem:[#allocation3 + $0x28] sm:$0xff]  ;;  %v35_v5 = vld [vmem:[#allocation3 + $0x38] sm:$0xff]  ;;  %v28_v6 = vld [vmem:[#allocation3] sm:$0xff]  ;;  %vm229_vm1 = vcmask 261120   ;;  %v2023_v51 = vmov 1966171168  }
  0x14   :  { %v1822_v4 = vpack.c.bf16 %v33_v2, %v29_v1  ;;  %v32_v7 = vld [vmem:[#allocation3 + $0x20] sm:$0xff]  ;;  %v1826_v8 = vpack.c.bf16 %v35_v5, %v31_v3  ;;  %v30_v10 = vld [vmem:[#allocation3 + $0x10] sm:$0xff]  ;;  %v37_v14 = vld [vmem:[#allocation3 + $0x48] sm:$0xff]  ;;  %v57_v40 = vshrl.u32 %v56_v39, 7  ;;  %v382_v52 = vunpack.c.l.s4 %v2023_v51 }
  0x15   :  { %v1824_v9 = vpack.c.bf16 %v32_v7, %v28_v6  ;;  %v34_v11 = vld [vmem:[#allocation3 + $0x30] sm:$0xff]  ;;  %v54_v12 = vld [vmem:[%s2213_s0] sm:$0xff]  ;;  %v41_v15 = vld [vmem:[#allocation3 + $0x68] sm:$0xff]  ;;  %vm1796_vm2 = vcmask 253952  }
  0x16   :  { %1823 = vmatprep.subr.bf16.mxu0 %v1822_v4  ;;  %v1828_v13 = vpack.c.bf16 %v34_v11, %v30_v10  ;;  %v39_v16 = vld [vmem:[#allocation3 + $0x58] sm:$0xff]  ;;  %1827 = vmatprep.subr.bf16.mxu1 %v1826_v8  ;;  %v2061_v17 = vpack.c.bf16 %v41_v15, %v37_v14  ;;  %v36_v19 = vld [vmem:[#allocation3 + $0x40] sm:$0xff]  ;;  %v38_v23 = vld [vmem:[#allocation3 + $0x50] sm:$0xff]  ;;  %v58_v41 = vsub.s32 0, %v57_v40  ;;  %v66_v43 = vsub.s32 2, %v57_v40 }
  0x17   :  { %1825 = vmatpush1.bf16.msra.mxu0 %v1824_v9  ;;  %v43_v18 = vld [vmem:[#allocation3 + $0x78] sm:$0xff]  ;;  %v40_v20 = vld [vmem:[#allocation3 + $0x60] sm:$0xff]  ;;  %v42_v24 = vld [vmem:[#allocation3 + $0x70] sm:$0xff]  ;;  %v62_v44 = vsub.s32 1, %v57_v40  ;;  %v70_v45 = vsub.s32 3, %v57_v40  ;;  %v383_v60 = vunpack.c.0.s8 %v382_v52 }
  0x18   :  { %1829 = vmatpush1.bf16.msra.mxu1 %v1828_v13  ;;  %v2063_v21 = vpack.c.bf16 %v43_v18, %v39_v16  ;;  %v2065_v22 = vpack.c.bf16 %v40_v20, %v36_v19  ;;  %v45_v25 = vld [vmem:[#allocation3 + $0x88] sm:$0xff]  ;;  %1831 = vmatprep.subr.bf16.mxu0 %v2061_v17  ;;  %v2068_v26 = vpack.c.bf16 %v42_v24, %v38_v23  ;;  %v47_v28 = vld [vmem:[#allocation3 + $0x98] sm:$0xff]  ;;  %v44_v32 = vld [vmem:[#allocation3 + $0x80] sm:$0xff] }
  0x19   :  { %v49_v27 = vld [vmem:[#allocation3 + $0xa8] sm:$0xff]  ;;  %v51_v29 = vld [vmem:[#allocation3 + $0xb8] sm:$0xff]  ;;  %v48_v33 = vld [vmem:[#allocation3 + $0xa0] sm:$0xff]  ;;  %v2106_v61 = vsub.s32 %v383_v60, %v57_v40 }
  0x1a   :  { %1804 = vmatmul.mubr.msk.f32.vlgmr.msra.gmra.mrb[0].mxu0 %vm76_vm0, %v54_v12  ;;  %1839 = vmatprep.subr.bf16.mxu1 %v2063_v21  ;;  %v2072_v30 = vpack.c.bf16 %v49_v27, %v45_v25  ;;  %v2074_v31 = vpack.c.bf16 %v51_v29, %v47_v28  ;;  %v46_v34 = vld [vmem:[#allocation3 + $0x90] sm:$0xff]  ;;  %v2078_v35 = vpack.c.bf16 %v48_v33, %v44_v32  ;;  %v226_v38 = vld [vmem:[%s2215_s2] sm:$0x1]  ;;  %v227_v16 = vld [vmem:[%s2215_s2 + $0x1] sm:$0x1] }
  0x1b   :  { %1805 = vmatmul.mubr.msk.f32.vlgmr.msra.gmra.mrb[0].mxu1 %vm76_vm0, %v54_v12  ;;  %1833 = vmatpush1.bf16.msra.mxu0 %v2065_v22  ;;  %v50_v36 = vld [vmem:[#allocation3 + $0xb0] sm:$0xff] }
  0x1c   :  { %1841 = vmatpush1.bf16.msra.mxu1 %v2068_v26  ;;  %1835 = vmatprep.subr.bf16.mxu0 %v2072_v30  ;;  %v2082_v37 = vpack.c.bf16 %v50_v36, %v46_v34  ;;  %v53_v42 = vld [vmem:[#allocation3 + $0xc0] ss:$8 sm:$0xf] }
  0x1d   :  { %1843 = vmatprep.subr.bf16.mxu1 %v2074_v31  ;;  %297 = vmatprep.mubr.f32.mxu0 %v2022_v0  ;;  %v59_v46 = vrot.slane %v53_v42, %v58_v41  ;;  %v67_v47 = vrot.slane %v53_v42, %v66_v43  ;;  %v63_v48 = vrot.slane %v53_v42, %v62_v44 }
  0x1e   :  { %368 = vmatprep.mubr.f32.mxu1 %v2022_v0  ;;  %v71_v49 = vrot.slane %v53_v42, %v70_v45 }
  0x1f   :  { %1837 = vmatpush1.bf16.msra.mxu0 %v2078_v35 }
  0x20   :  { %1845 = vmatpush1.bf16.msra.mxu1 %v2082_v37  ;;  %1847 = vmatprep.subr.bf16.mxu0 %v2061_v17 }
  0x21   :  { %1855 = vmatprep.subr.bf16.mxu1 %v2063_v21 }
  0x22   :  { %1806 = vmatmul.mubr.msk.f32.vlgmr.msra.gmra.mrb[2].mxu0 %vm229_vm1, %v226_v38 }
  0x23   :  { %1807 = vmatmul.mubr.msk.f32.vlgmr.msra.gmra.mrb[2].mxu1 %vm229_vm1, %v226_v38  ;;  %1849 = vmatpush1.bf16.msra.mxu0 %v2065_v22 }
  0x24   :  { %1857 = vmatpush1.bf16.msra.mxu1 %v2068_v26  ;;  %1851 = vmatprep.subr.bf16.mxu0 %v2072_v30 }
  0x25   :  { %1859 = vmatprep.subr.bf16.mxu1 %v2074_v31  ;;  %493 = vmatprep.mubr.f32.mxu0 %v2022_v0 }
  0x26   :  { %564 = vmatprep.mubr.f32.mxu1 %v2022_v0 }
  0x27   :  { %1853 = vmatpush1.bf16.msra.mxu0 %v2078_v35 }
  0x28   :  { %1861 = vmatpush1.bf16.msra.mxu1 %v2082_v37  ;;  %1863 = vmatprep.subr.bf16.mxu0 %v2061_v17 }
  0x29   :  { %1871 = vmatprep.subr.bf16.mxu1 %v2063_v21 }
  0xed   :  { %v146_v50 = vpop.f32.mrb[0].mxu0 }
  0xee   :  { %v147_v53 = vadd.f32 %v146_v50, %v59_v46  ;;  %v217_v54 = vpop.f32.mrb[0].mxu1  ;;  %v148_v55 = vpop.f32.mrb[1].mxu0 }
  0xef   :  { %v218_v56 = vadd.f32 %v217_v54, %v67_v47  ;;  %v149_v57 = vadd.f32 %v148_v55, %v63_v48  ;;  %v219_v58 = vpop.f32.mrb[1].mxu1 }
  0xf0   :  { %222 = vst [vmem:[#allocation2] sm:$0xff] %v147_v53  ;;  %v220_v59 = vadd.f32 %v219_v58, %v71_v49 }
  0xf1   :  { %224 = vst [vmem:[#allocation2 + $0x10] sm:$0xff] %v218_v56  ;;  %223 = vst [vmem:[#allocation2 + $0x8] sm:$0xff] %v149_v57 }
  0xf2   :  { %225 = vst [vmem:[#allocation2 + $0x18] sm:$0xff] %v220_v59 }
  0xf5   :  { %v299_v62 = vpop.f32.mrb[2].mxu0 }
  0xf6   :  { %v370_v63 = vpop.f32.mrb[2].mxu1  ;;  %v301_v1 = vpop.f32.mrb[3].mxu0 }
  0xf7   :  { %v379_v2 = vcombine.low %v299_v62, %v301_v1  ;;  %v372_v3 = vpop.f32.mrb[3].mxu1 }
  0xf8   :  { %v380_v4 = vcombine.low %v370_v63, %v372_v3 }
  0xf9   :  { %v387_v5 = vrot.slane %v379_v2, %v2106_v61  ;;  %v228_v9 = vld [vmem:[#allocation2] ss:$8 sm:$0xf]  ;;  %v425_v45 = vld [vmem:[#allocation2 + $0x1] ss:$8 sm:$0xf] }
  0xfa   :  { %v394_v6 = vrot.slane %v380_v4, %v2106_v61 }
  0xfc   :  { %v395_v7 = vcombine.low %v387_v5, %v394_v6 }
  0xfe   :  { %v402_v8 = vrot.slane %v395_v7, %v2106_v61 }
 0x100   :  { %v404_v10 = vadd.f32 %v402_v8, %v228_v9 }
 0x102   :  { %1963 = vtanh.f32 %v404_v10  ;;  %v621_v10 = vld [vmem:[#allocation2 + $0x2] ss:$8 sm:$0xf] }
 0x10c   :  { %v1964_v11 = vpop.eup %1963 }
 0x10d   :  { %v406_v12 = vmul.f32 0.5, %v1964_v11  ;;  %v409_v13 = vrot.slane %v1964_v11, 1  ;;  %v418_v19 = vrot.slane %v1964_v11, 2  ;;  %v413_v25 = vrot.slane %v1964_v11, 3 }
 0x10f   :  { %v407_v14 = vadd.f32 0.5, %v406_v12  ;;  %v411_v15 = vmul.f32 0.5, %v409_v13  ;;  %v415_v27 = vmul.f32 0.5, %v413_v25 }
 0x111   :  { %v412_v18 = vadd.f32 0.5, %v411_v15  ;;  %v420_v23 = vmul.f32 %v418_v19, %v407_v14  ;;  %v416_v28 = vadd.f32 0.5, %v415_v27 }
 0x113   :  { %v417_v20 = vmul.f32 %v412_v18, %v227_v16 }
 0x115   :  { %v421_v24 = vadd.f32 %v420_v23, %v417_v20 }
 0x117   :  { %1965 = vtanh.f32 %v421_v24 }
 0x121   :  { %v1966_v29 = vpop.eup %1965 }
 0x122   :  { %v423_v32 = vmul.f32 %v1966_v29, %v416_v28 }
 0x124   :  { %1808 = vmatmul.mubr.msk.f32.vlgmr.msra.gmra.mrb[4].mxu0 %vm229_vm1, %v423_v32  ;;  %1809 = vmatmul.mubr.msk.f32.vlgmr.msra.gmra.mrb[4].mxu1 %vm229_vm1, %v423_v32 }
 0x125   :  { %1865 = vmatpush1.bf16.msra.mxu0 %v2065_v22  ;;  %1873 = vmatpush1.bf16.msra.mxu1 %v2068_v26 }
 0x126   :  { %1867 = vmatprep.subr.bf16.mxu0 %v2072_v30  ;;  %1875 = vmatprep.subr.bf16.mxu1 %v2074_v31 }
 0x127   :  { %689 = vmatprep.mubr.f32.mxu0 %v2022_v0  ;;  %760 = vmatprep.mubr.f32.mxu1 %v2022_v0 }
 0x129   :  { %1869 = vmatpush1.bf16.msra.mxu0 %v2078_v35  ;;  %1877 = vmatpush1.bf16.msra.mxu1 %v2082_v37 }
 0x12a   :  { %1879 = vmatprep.subr.bf16.mxu0 %v2061_v17  ;;  %1887 = vmatprep.subr.bf16.mxu1 %v2063_v21 }
 0x1f7   :  { %v495_v33 = vpop.f32.mrb[4].mxu0  ;;  %v566_v34 = vpop.f32.mrb[4].mxu1 }
 0x1f8   :  { %v497_v36 = vpop.f32.mrb[5].mxu0  ;;  %v568_v38 = vpop.f32.mrb[5].mxu1 }
 0x1f9   :  { %v575_v39 = vcombine.low %v495_v33, %v497_v36  ;;  %v576_v40 = vcombine.low %v566_v34, %v568_v38 }
 0x1fb   :  { %v583_v41 = vrot.slane %v575_v39, %v2106_v61  ;;  %v590_v42 = vrot.slane %v576_v40, %v2106_v61 }
 0x1fd   :  { %v591_v43 = vcombine.low %v583_v41, %v590_v42 }
 0x1ff   :  { %v598_v44 = vrot.slane %v591_v43, %v2106_v61 }
 0x201   :  { %v600_v46 = vadd.f32 %v598_v44, %v425_v45  ;;  %v817_v45 = vld [vmem:[#allocation2 + $0x3] ss:$8 sm:$0xf] }
 0x203   :  { %1967 = vtanh.f32 %v600_v46 }
 0x20d   :  { %v1968_v47 = vpop.eup %1967 }
 0x20e   :  { %v602_v48 = vmul.f32 0.5, %v1968_v47  ;;  %v605_v49 = vrot.slane %v1968_v47, 1  ;;  %v614_v53 = vrot.slane %v1968_v47, 2  ;;  %v609_v57 = vrot.slane %v1968_v47, 3 }
 0x210   :  { %v603_v50 = vadd.f32 0.5, %v602_v48  ;;  %v607_v51 = vmul.f32 0.5, %v605_v49  ;;  %v611_v58 = vmul.f32 0.5, %v609_v57 }
 0x212   :  { %v608_v52 = vadd.f32 0.5, %v607_v51  ;;  %v616_v55 = vmul.f32 %v614_v53, %v603_v50  ;;  %v612_v59 = vadd.f32 0.5, %v611_v58 }
 0x214   :  { %v613_v54 = vmul.f32 %v608_v52, %v421_v24 }
 0x216   :  { %v617_v56 = vadd.f32 %v616_v55, %v613_v54 }
 0x218   :  { %1969 = vtanh.f32 %v617_v56 }
 0x222   :  { %v1970_v60 = vpop.eup %1969 }
 0x223   :  { %v619_v62 = vmul.f32 %v1970_v60, %v612_v59 }
 0x225   :  { %1810 = vmatmul.mubr.msk.f32.vlgmr.msra.gmra.mrb[6].mxu0 %vm229_vm1, %v619_v62  ;;  %1811 = vmatmul.mubr.msk.f32.vlgmr.msra.gmra.mrb[6].mxu1 %vm229_vm1, %v619_v62 }
 0x226   :  { %1881 = vmatpush1.bf16.msra.mxu0 %v2065_v22  ;;  %1889 = vmatpush1.bf16.msra.mxu1 %v2068_v26 }
 0x227   :  { %1883 = vmatprep.subr.bf16.mxu0 %v2072_v30  ;;  %1891 = vmatprep.subr.bf16.mxu1 %v2074_v31 }
 0x228   :  { %885 = vmatprep.mubr.f32.mxu0 %v2022_v0  ;;  %956 = vmatprep.mubr.f32.mxu1 %v2022_v0 }
 0x22a   :  { %1885 = vmatpush1.bf16.msra.mxu0 %v2078_v35  ;;  %1893 = vmatpush1.bf16.msra.mxu1 %v2082_v37 }
 0x22b   :  { %1895 = vmatprep.subr.bf16.mxu0 %v2061_v17  ;;  %1903 = vmatprep.subr.bf16.mxu1 %v2063_v21 }
 0x2f8   :  { %v691_v63 = vpop.f32.mrb[6].mxu0  ;;  %v762_v1 = vpop.f32.mrb[6].mxu1 }
 0x2f9   :  { %v693_v2 = vpop.f32.mrb[7].mxu0  ;;  %v764_v3 = vpop.f32.mrb[7].mxu1 }
 0x2fa   :  { %v771_v4 = vcombine.low %v691_v63, %v693_v2  ;;  %v772_v5 = vcombine.low %v762_v1, %v764_v3 }
 0x2fc   :  { %v779_v6 = vrot.slane %v771_v4, %v2106_v61  ;;  %v786_v7 = vrot.slane %v772_v5, %v2106_v61 }
 0x2fe   :  { %v787_v8 = vcombine.low %v779_v6, %v786_v7 }
 0x300   :  { %v794_v9 = vrot.slane %v787_v8, %v2106_v61 }
 0x302   :  { %v796_v11 = vadd.f32 %v794_v9, %v621_v10  ;;  %v1013_v10 = vld [vmem:[#allocation2 + $0x4] ss:$8 sm:$0xf] }
 0x304   :  { %1971 = vtanh.f32 %v796_v11 }
 0x30e   :  { %v1972_v12 = vpop.eup %1971 }
 0x30f   :  { %v798_v13 = vmul.f32 0.5, %v1972_v12  ;;  %v801_v14 = vrot.slane %v1972_v12, 1  ;;  %v810_v19 = vrot.slane %v1972_v12, 2  ;;  %v805_v25 = vrot.slane %v1972_v12, 3 }
 0x311   :  { %v799_v15 = vadd.f32 0.5, %v798_v13  ;;  %v803_v16 = vmul.f32 0.5, %v801_v14  ;;  %v807_v27 = vmul.f32 0.5, %v805_v25 }
 0x313   :  { %v804_v18 = vadd.f32 0.5, %v803_v16  ;;  %v812_v23 = vmul.f32 %v810_v19, %v799_v15  ;;  %v808_v28 = vadd.f32 0.5, %v807_v27 }
 0x315   :  { %v809_v20 = vmul.f32 %v804_v18, %v617_v56 }
 0x317   :  { %v813_v24 = vadd.f32 %v812_v23, %v809_v20 }
 0x319   :  { %1973 = vtanh.f32 %v813_v24 }
 0x323   :  { %v1974_v29 = vpop.eup %1973 }
 0x324   :  { %v815_v32 = vmul.f32 %v1974_v29, %v808_v28 }
 0x326   :  { %1812 = vmatmul.mubr.msk.f32.vlgmr.msra.gmra.mrb[8].mxu0 %vm229_vm1, %v815_v32  ;;  %1813 = vmatmul.mubr.msk.f32.vlgmr.msra.gmra.mrb[8].mxu1 %vm229_vm1, %v815_v32 }
 0x327   :  { %1897 = vmatpush1.bf16.msra.mxu0 %v2065_v22  ;;  %1905 = vmatpush1.bf16.msra.mxu1 %v2068_v26 }
 0x328   :  { %1899 = vmatprep.subr.bf16.mxu0 %v2072_v30  ;;  %1907 = vmatprep.subr.bf16.mxu1 %v2074_v31 }
 0x329   :  { %1081 = vmatprep.mubr.f32.mxu0 %v2022_v0  ;;  %1152 = vmatprep.mubr.f32.mxu1 %v2022_v0 }
 0x32b   :  { %1901 = vmatpush1.bf16.msra.mxu0 %v2078_v35  ;;  %1909 = vmatpush1.bf16.msra.mxu1 %v2082_v37 }
 0x32c   :  { %1911 = vmatprep.subr.bf16.mxu0 %v2061_v17  ;;  %1919 = vmatprep.subr.bf16.mxu1 %v2063_v21 }
 0x3f9   :  { %v887_v33 = vpop.f32.mrb[8].mxu0  ;;  %v958_v34 = vpop.f32.mrb[8].mxu1 }
 0x3fa   :  { %v889_v36 = vpop.f32.mrb[9].mxu0  ;;  %v960_v38 = vpop.f32.mrb[9].mxu1 }
 0x3fb   :  { %v967_v39 = vcombine.low %v887_v33, %v889_v36  ;;  %v968_v40 = vcombine.low %v958_v34, %v960_v38 }
 0x3fd   :  { %v975_v41 = vrot.slane %v967_v39, %v2106_v61  ;;  %v982_v42 = vrot.slane %v968_v40, %v2106_v61 }
 0x3ff   :  { %v983_v43 = vcombine.low %v975_v41, %v982_v42 }
 0x401   :  { %v990_v44 = vrot.slane %v983_v43, %v2106_v61 }
 0x403   :  { %v992_v46 = vadd.f32 %v990_v44, %v817_v45  ;;  %v1209_v45 = vld [vmem:[#allocation2 + $0x5] ss:$8 sm:$0xf] }
 0x405   :  { %1975 = vtanh.f32 %v992_v46 }
 0x40f   :  { %v1976_v47 = vpop.eup %1975 }
 0x410   :  { %v994_v48 = vmul.f32 0.5, %v1976_v47  ;;  %v997_v49 = vrot.slane %v1976_v47, 1  ;;  %v1006_v53 = vrot.slane %v1976_v47, 2  ;;  %v1001_v57 = vrot.slane %v1976_v47, 3 }
 0x412   :  { %v995_v50 = vadd.f32 0.5, %v994_v48  ;;  %v999_v51 = vmul.f32 0.5, %v997_v49  ;;  %v1003_v58 = vmul.f32 0.5, %v1001_v57 }
 0x414   :  { %v1000_v52 = vadd.f32 0.5, %v999_v51  ;;  %v1008_v55 = vmul.f32 %v1006_v53, %v995_v50  ;;  %v1004_v59 = vadd.f32 0.5, %v1003_v58 }
 0x416   :  { %v1005_v54 = vmul.f32 %v1000_v52, %v813_v24 }
 0x418   :  { %v1009_v56 = vadd.f32 %v1008_v55, %v1005_v54 }
 0x41a   :  { %1977 = vtanh.f32 %v1009_v56 }
 0x424   :  { %v1978_v60 = vpop.eup %1977 }
 0x425   :  { %v1011_v62 = vmul.f32 %v1978_v60, %v1004_v59 }
 0x427   :  { %1814 = vmatmul.mubr.msk.f32.vlgmr.msra.gmra.mrb[10].mxu0 %vm229_vm1, %v1011_v62  ;;  %1815 = vmatmul.mubr.msk.f32.vlgmr.msra.gmra.mrb[10].mxu1 %vm229_vm1, %v1011_v62 }
 0x428   :  { %1913 = vmatpush1.bf16.msra.mxu0 %v2065_v22  ;;  %1921 = vmatpush1.bf16.msra.mxu1 %v2068_v26 }
 0x429   :  { %1915 = vmatprep.subr.bf16.mxu0 %v2072_v30  ;;  %1923 = vmatprep.subr.bf16.mxu1 %v2074_v31 }
 0x42a   :  { %1277 = vmatprep.mubr.f32.mxu0 %v2022_v0  ;;  %1348 = vmatprep.mubr.f32.mxu1 %v2022_v0 }
 0x42c   :  { %1917 = vmatpush1.bf16.msra.mxu0 %v2078_v35  ;;  %1925 = vmatpush1.bf16.msra.mxu1 %v2082_v37 }
 0x42d   :  { %1927 = vmatprep.subr.bf16.mxu0 %v2061_v17  ;;  %1935 = vmatprep.subr.bf16.mxu1 %v2063_v21 }
 0x4fa   :  { %v1083_v63 = vpop.f32.mrb[10].mxu0  ;;  %v1154_v1 = vpop.f32.mrb[10].mxu1 }
 0x4fb   :  { %v1085_v2 = vpop.f32.mrb[11].mxu0  ;;  %v1156_v3 = vpop.f32.mrb[11].mxu1 }
 0x4fc   :  { %v1163_v4 = vcombine.low %v1083_v63, %v1085_v2  ;;  %v1164_v5 = vcombine.low %v1154_v1, %v1156_v3 }
 0x4fe   :  { %v1171_v6 = vrot.slane %v1163_v4, %v2106_v61  ;;  %v1178_v7 = vrot.slane %v1164_v5, %v2106_v61  ;;  %v1405_v4 = vld [vmem:[#allocation2 + $0x6] ss:$8 sm:$0xf] }
 0x500   :  { %v1179_v8 = vcombine.low %v1171_v6, %v1178_v7 }
 0x502   :  { %v1186_v9 = vrot.slane %v1179_v8, %v2106_v61 }
 0x504   :  { %v1188_v11 = vadd.f32 %v1186_v9, %v1013_v10 }
 0x506   :  { %1979 = vtanh.f32 %v1188_v11 }
 0x510   :  { %v1980_v12 = vpop.eup %1979 }
 0x511   :  { %v1190_v13 = vmul.f32 0.5, %v1980_v12  ;;  %v1193_v14 = vrot.slane %v1980_v12, 1  ;;  %v1202_v19 = vrot.slane %v1980_v12, 2  ;;  %v1197_v25 = vrot.slane %v1980_v12, 3 }
 0x513   :  { %v1191_v15 = vadd.f32 0.5, %v1190_v13  ;;  %v1195_v16 = vmul.f32 0.5, %v1193_v14  ;;  %v1199_v27 = vmul.f32 0.5, %v1197_v25 }
 0x515   :  { %v1196_v18 = vadd.f32 0.5, %v1195_v16  ;;  %v1204_v23 = vmul.f32 %v1202_v19, %v1191_v15  ;;  %v1200_v28 = vadd.f32 0.5, %v1199_v27 }
 0x517   :  { %v1201_v20 = vmul.f32 %v1196_v18, %v1009_v56 }
 0x519   :  { %v1205_v24 = vadd.f32 %v1204_v23, %v1201_v20 }
 0x51b   :  { %1981 = vtanh.f32 %v1205_v24 }
 0x525   :  { %v1982_v29 = vpop.eup %1981 }
 0x526   :  { %v1207_v32 = vmul.f32 %v1982_v29, %v1200_v28 }
 0x528   :  { %1816 = vmatmul.mubr.msk.f32.vlgmr.msra.gmra.mrb[12].mxu0 %vm229_vm1, %v1207_v32  ;;  %1817 = vmatmul.mubr.msk.f32.vlgmr.msra.gmra.mrb[12].mxu1 %vm229_vm1, %v1207_v32 }
 0x529   :  { %1929 = vmatpush1.bf16.msra.mxu0 %v2065_v22  ;;  %1937 = vmatpush1.bf16.msra.mxu1 %v2068_v26 }
 0x52a   :  { %1931 = vmatprep.subr.bf16.mxu0 %v2072_v30  ;;  %1939 = vmatprep.subr.bf16.mxu1 %v2074_v31 }
 0x52b   :  { %1473 = vmatprep.mubr.f32.mxu0 %v2022_v0  ;;  %1544 = vmatprep.mubr.f32.mxu1 %v2022_v0 }
 0x52d   :  { %1933 = vmatpush1.bf16.msra.mxu0 %v2078_v35  ;;  %1941 = vmatpush1.bf16.msra.mxu1 %v2082_v37 }
 0x52e   :  { %1943 = vmatprep.subr.bf16.mxu0 %v2061_v17  ;;  %1951 = vmatprep.subr.bf16.mxu1 %v2063_v21 }
 0x5fb   :  { %v1279_v33 = vpop.f32.mrb[12].mxu0  ;;  %v1350_v34 = vpop.f32.mrb[12].mxu1 }
 0x5fc   :  { %v1281_v36 = vpop.f32.mrb[13].mxu0  ;;  %v1352_v38 = vpop.f32.mrb[13].mxu1 }
 0x5fd   :  { %v1359_v39 = vcombine.low %v1279_v33, %v1281_v36  ;;  %v1360_v40 = vcombine.low %v1350_v34, %v1352_v38  ;;  %v1601_v34 = vld [vmem:[#allocation2 + $0x7] ss:$8 sm:$0xf] }
 0x5ff   :  { %v1367_v41 = vrot.slane %v1359_v39, %v2106_v61  ;;  %v1374_v42 = vrot.slane %v1360_v40, %v2106_v61 }
 0x601   :  { %v1375_v43 = vcombine.low %v1367_v41, %v1374_v42 }
 0x603   :  { %v1382_v44 = vrot.slane %v1375_v43, %v2106_v61 }
 0x605   :  { %v1384_v46 = vadd.f32 %v1382_v44, %v1209_v45 }
 0x607   :  { %1983 = vtanh.f32 %v1384_v46 }
 0x611   :  { %v1984_v47 = vpop.eup %1983 }
 0x612   :  { %v1386_v17 = vmul.f32 0.5, %v1984_v47  ;;  %v1389_v48 = vrot.slane %v1984_v47, 1  ;;  %v1398_v51 = vrot.slane %v1984_v47, 2  ;;  %v1393_v55 = vrot.slane %v1984_v47, 3 }
 0x614   :  { %v1387_v21 = vadd.f32 0.5, %v1386_v17  ;;  %v1391_v49 = vmul.f32 0.5, %v1389_v48  ;;  %v1395_v56 = vmul.f32 0.5, %v1393_v55 }
 0x616   :  { %v1392_v50 = vadd.f32 0.5, %v1391_v49  ;;  %v1400_v53 = vmul.f32 %v1398_v51, %v1387_v21  ;;  %v1396_v57 = vadd.f32 0.5, %v1395_v56 }
 0x618   :  { %v1397_v52 = vmul.f32 %v1392_v50, %v1205_v24 }
 0x61a   :  { %v1401_v54 = vadd.f32 %v1400_v53, %v1397_v52 }
 0x61c   :  { %1985 = vtanh.f32 %v1401_v54 }
 0x626   :  { %v1986_v58 = vpop.eup %1985 }
 0x627   :  { %v1403_v59 = vmul.f32 %v1986_v58, %v1396_v57 }
 0x629   :  { %1818 = vmatmul.mubr.msk.f32.vlgmr.msra.gmra.mrb[14].mxu0 %vm229_vm1, %v1403_v59  ;;  %1819 = vmatmul.mubr.msk.f32.vlgmr.msra.gmra.mrb[14].mxu1 %vm229_vm1, %v1403_v59 }
 0x62a   :  { %1945 = vmatpush1.bf16.msra.mxu0 %v2065_v22  ;;  %1953 = vmatpush1.bf16.msra.mxu1 %v2068_v26 }
 0x62b   :  { %1947 = vmatprep.subr.bf16.mxu0 %v2072_v30  ;;  %1955 = vmatprep.subr.bf16.mxu1 %v2074_v31 }
 0x62c   :  { %1669 = vmatprep.mubr.f32.mxu0 %v2022_v0  ;;  %1740 = vmatprep.mubr.f32.mxu1 %v2022_v0 }
 0x62e   :  { %1949 = vmatpush1.bf16.msra.mxu0 %v2078_v35  ;;  %1957 = vmatpush1.bf16.msra.mxu1 %v2082_v37 }
 0x6fc   :  { %v1475_v60 = vpop.f32.mrb[14].mxu0  ;;  %v1546_v62 = vpop.f32.mrb[14].mxu1 }
 0x6fd   :  { %v1477_v63 = vpop.f32.mrb[15].mxu0  ;;  %v1548_v1 = vpop.f32.mrb[15].mxu1 }
 0x6fe   :  { %v1555_v2 = vcombine.low %v1475_v60, %v1477_v63  ;;  %v1556_v22 = vcombine.low %v1546_v62, %v1548_v1 }
 0x700   :  { %v1563_v26 = vrot.slane %v1555_v2, %v2106_v61  ;;  %v1570_v30 = vrot.slane %v1556_v22, %v2106_v61 }
 0x702   :  { %v1571_v3 = vcombine.low %v1563_v26, %v1570_v30 }
 0x704   :  { %v1578_v31 = vrot.slane %v1571_v3, %v2106_v61 }
 0x706   :  { %v1580_v5 = vadd.f32 %v1578_v31, %v1405_v4 }
 0x708   :  { %1987 = vtanh.f32 %v1580_v5 }
 0x712   :  { %v1988_v0 = vpop.eup %1987 }
 0x713   :  { %v1582_v35 = vmul.f32 0.5, %v1988_v0  ;;  %v1585_v6 = vrot.slane %v1988_v0, 1  ;;  %v1594_v9 = vrot.slane %v1988_v0, 2  ;;  %v1589_v13 = vrot.slane %v1988_v0, 3 }
 0x715   :  { %v1583_v37 = vadd.f32 0.5, %v1582_v35  ;;  %v1587_v7 = vmul.f32 0.5, %v1585_v6  ;;  %v1591_v14 = vmul.f32 0.5, %v1589_v13 }
 0x717   :  { %v1588_v8 = vadd.f32 0.5, %v1587_v7  ;;  %v1596_v11 = vmul.f32 %v1594_v9, %v1583_v37  ;;  %v1592_v15 = vadd.f32 0.5, %v1591_v14 }
 0x719   :  { %v1593_v10 = vmul.f32 %v1588_v8, %v1401_v54 }
 0x71b   :  { %v1597_v12 = vadd.f32 %v1596_v11, %v1593_v10 }
 0x71d   :  { %1989 = vtanh.f32 %v1597_v12 }
 0x727   :  { %v1990_v16 = vpop.eup %1989 }
 0x728   :  { %v1599_v18 = vmul.f32 %v1990_v16, %v1592_v15 }
 0x72a   :  { %1820 = vmatmul.mubr.msk.f32.vlgmr.msra.gmra.mrb[16].mxu0 %vm229_vm1, %v1599_v18  ;;  %1821 = vmatmul.mubr.msk.f32.vlgmr.msra.gmra.mrb[16].mxu1 %vm229_vm1, %v1599_v18 }
 0x7fd   :  { %v1671_v19 = vpop.f32.mrb[16].mxu0  ;;  %v1742_v20 = vpop.f32.mrb[16].mxu1 }
 0x7fe   :  { %v1673_v23 = vpop.f32.mrb[17].mxu0  ;;  %v1744_v24 = vpop.f32.mrb[17].mxu1 }
 0x7ff   :  { %v1751_v25 = vcombine.low %v1671_v19, %v1673_v23  ;;  %v1752_v27 = vcombine.low %v1742_v20, %v1744_v24 }
 0x801   :  { %v1759_v28 = vrot.slane %v1751_v25, %v2106_v61  ;;  %v1766_v29 = vrot.slane %v1752_v27, %v2106_v61 }
 0x803   :  { %v1767_v32 = vcombine.low %v1759_v28, %v1766_v29 }
 0x805   :  { %v1774_v33 = vrot.slane %v1767_v32, %v2106_v61 }
 0x807   :  { %v1776_v36 = vadd.f32 %v1774_v33, %v1601_v34 }
 0x809   :  { %1991 = vtanh.f32 %v1776_v36 }
 0x813   :  { %v1992_v38 = vpop.eup %1991 }
 0x814   :  { %v1778_v39 = vmul.f32 0.5, %v1992_v38  ;;  %v1781_v40 = vrot.slane %v1992_v38, 1  ;;  %v1790_v44 = vrot.slane %v1992_v38, 2  ;;  %v1785_v61 = vrot.slane %v1992_v38, 3 }
 0x816   :  { %v1779_v41 = vadd.f32 0.5, %v1778_v39  ;;  %v1783_v42 = vmul.f32 0.5, %v1781_v40  ;;  %v1787_v17 = vmul.f32 0.5, %v1785_v61 }
 0x818   :  { %v1784_v43 = vadd.f32 0.5, %v1783_v42  ;;  %v1792_v46 = vmul.f32 %v1790_v44, %v1779_v41  ;;  %v1788_v48 = vadd.f32 0.5, %v1787_v17 }
 0x81a   :  { %v1789_v45 = vmul.f32 %v1784_v43, %v1597_v12 }
 0x81c   :  { %v1793_v47 = vadd.f32 %v1792_v46, %v1789_v45 }
 0x81e   :  { %1993 = vtanh.f32 %v1793_v47  ;;  %1798 = vst.msk [vmem:[%s2216_s3 + $0x1] sm:$0x1] %vm1796_vm2, %v1793_v47 }
 0x828   :  { %v1994_v21 = vpop.eup %1993 }
 0x829   :  { %v1795_v49 = vmul.f32 %v1994_v21, %v1788_v48 }
 0x82b   :  { %1797 = vst.msk [vmem:[%s2216_s3] sm:$0x1] %vm1796_vm2, %v1795_v49 }
 0x82c   :  { %1803 = vsyncpa [#allocation4], 1 }

</bundles_post_ra>
